<compile_context>
chip_gen: v7x
topology: tpu7x:2x2x1
jax: 0.10.0
libtpu: 0.0.40
codegen_flags: <defaults>
</compile_context>

<pallas_src>
import jax
import jax.numpy as jnp
from jax.experimental import pallas as pl
from jax.experimental.pallas import tpu as pltpu

# ---- model configuration (synthetic acoustic model) -------------------------
FRAME_LEN = 32          # samples per frame (F)
HIDDEN = 32             # hidden width (H)
LABELS = ['<s>', '<pad>', '</s>', '<unk>', '|', 'E', 'T', 'A', 'O', 'N', 'I',
          'H', 'S', 'R', 'D', 'L', 'U', 'M', 'W', 'C', 'F', 'G', 'Y', 'P',
          'B', 'V', 'K', "'", 'X', 'J', 'Q', 'Z']
NUM_LABELS = len(LABELS)  # 32
MAX_TILE_T = 8192         # frames per grid step (multiple of 128)


def _round_up(n, m):
    return -(-n // m) * m


def _speech_kernel(x_ref, w_ref, b_ref, path_ref):
    """Frame-wise MLP + argmax over labels for one time tile (time on lanes).

    x_ref    : [F, TILE_T]  bfloat16  (frames on the lane axis)
    w_ref    : [H + L, F]   bfloat16  (rows 0:H = w1^T, rows H:H+L = w2^T; F == H)
    b_ref    : [H, 2]       float32   (col 0 = b1, col 1 = b2; H == L)
    path_ref : [1, TILE_T]  int32 (out) -- argmax label index per frame
    """
    x = x_ref[...]                                         # [F, TILE_T] bf16
    w1t = w_ref[0:HIDDEN, :]                               # [H, F] bf16
    w2t = w_ref[HIDDEN:HIDDEN + NUM_LABELS, :]             # [L, H] bf16

    h = jnp.dot(w1t, x, preferred_element_type=jnp.float32)        # [H, TILE_T]
    h = jnp.maximum(h + b_ref[:, 0:1], 0.0)                        # f32 epilogue
    logits = jnp.dot(w2t, h.astype(jnp.bfloat16),
                     preferred_element_type=jnp.float32) + b_ref[:, 1:2]  # [L, TILE_T]

    # argmax over the label axis (now the SUBLANE axis), first-occurrence
    # tie-break (matches torch.argmax default behaviour).
    num_labels = logits.shape[0]
    label_ids = jax.lax.broadcasted_iota(jnp.int32, logits.shape, 0)
    max_val = jnp.max(logits, axis=0, keepdims=True)               # [1, TILE_T]
    masked = jnp.where(logits == max_val, label_ids, jnp.int32(num_labels))
    best = jnp.min(masked, axis=0, keepdims=True)                  # [1, TILE_T]
    # NaN safety: an all-NaN column leaves the sentinel; clamp into label range
    # so the host decode can never index out of bounds.
    best = jnp.minimum(best, jnp.int32(num_labels - 1))
    path_ref[...] = best.astype(jnp.int32)                         # lane-dense store


def _choose_tile_t(num_frames):
    """Lane-dense tile: multiple of 128, capped at MAX_TILE_T, and sized so
    the grid has >= 2 steps for large T (lets v7x use both TensorCores)."""
    T = max(num_frames, 1)
    tile = min(MAX_TILE_T, _round_up(-(-T // 2), 128))
    return max(tile, 128)


def run_acoustic_model(xT, w, b, tile_t):
    """xT: [F, T_pad] bf16 framed waveform, time on lanes (T_pad % tile_t == 0).

    Returns best_path [T_pad] int32 (argmax label per frame).
    """
    F, T_pad = xT.shape
    H, L = HIDDEN, NUM_LABELS
    grid_t = T_pad // tile_t

    flops = 2 * T_pad * F * H + 2 * T_pad * H * L
    bytes_accessed = (xT.size * 2            # bf16 input stream
                      + w.size * 2 + b.size * 4
                      + T_pad * 4)           # int32 path output

    path = pl.pallas_call(
        _speech_kernel,
        out_shape=jax.ShapeDtypeStruct((1, T_pad), jnp.int32),
        grid=(grid_t,),
        in_specs=[
            pl.BlockSpec((F, tile_t), lambda i: (0, i)),       # streamed over time
            pl.BlockSpec((H + L, F), lambda i: (0, 0)),        # resident weights
            pl.BlockSpec((H, 2), lambda i: (0, 0)),            # resident biases
        ],
        out_specs=pl.BlockSpec((1, tile_t), lambda i: (0, i)), # lane-dense
        compiler_params=pltpu.CompilerParams(
            dimension_semantics=("parallel",)),                # frames independent
        cost_estimate=pl.CostEstimate(
            flops=flops, transcendentals=0, bytes_accessed=bytes_accessed),
    )(xT, w, b)
    return path[0]


def frame_waveform(waveforms):
    """[1, num_samples] f32 -> padded, transposed bf16 frames [F, T_pad] + (T, tile_t)."""
    num_samples = waveforms.shape[1]
    T = num_samples // FRAME_LEN
    tile_t = _choose_tile_t(T)
    T_pad = _round_up(max(T, 1), tile_t)
    x = waveforms[0, : T * FRAME_LEN].reshape(T, FRAME_LEN)
    xT = jnp.pad(x.T, ((0, 0), (0, T_pad - T)))                # time on lanes
    return xT.astype(jnp.bfloat16), T, tile_t


def pack_params(w1, b1, w2, b2):
    """Stage params for the transposed kernel.

    w1: [F, H], b1: [1, H], w2: [H, L], b2: [1, L]
    Returns (w_packed [H+L, F] bf16, b_packed [H, 2] f32).
    """
    # Packing relies on square, equal dims (F == H == L == 32).
    assert FRAME_LEN == HIDDEN == NUM_LABELS
    w = jnp.concatenate([w1.T, w2.T], axis=0).astype(jnp.bfloat16)   # [H+L, F]
    b = jnp.concatenate([b1.T, b2.T], axis=1).astype(jnp.float32)    # [H, 2]
    return w, b


def speech_recognizer_forward(waveforms, packed_params):
    """Mirror of SpeechRecognizer.forward.

    waveforms: [1, num_samples] float32.  Returns the transcript string.
    """
    w, b = packed_params
    xT, T, tile_t = frame_waveform(waveforms)
    best_path = run_acoustic_model(xT, w, b, tile_t)
    best_path = jax.device_get(best_path)[:T]

    # host-side greedy CTC-style decoding, identical to the reference loop
    prev = ''
    hypothesis = ''
    for i in best_path:
        char = LABELS[int(i)]
        if char == prev:
            continue
        if char == '<s>':
            prev = ''
            continue
        hypothesis += char
        prev = char
    return hypothesis.replace('|', ' ')


def init_params(key):
    k1, k2, k3, k4 = jax.random.split(key, 4)
    w1 = jax.random.normal(k1, (FRAME_LEN, HIDDEN), jnp.float32) * 0.1
    b1 = jax.random.normal(k2, (1, HIDDEN), jnp.float32) * 0.1
    w2 = jax.random.normal(k3, (HIDDEN, NUM_LABELS), jnp.float32) * 0.1
    b2 = jax.random.normal(k4, (1, NUM_LABELS), jnp.float32) * 0.1
    return w1, b1, w2, b2


if __name__ == "__main__":
    key = jax.random.PRNGKey(0)
    k_params, k_wave = jax.random.split(key)
    raw_params = init_params(k_params)
    packed = pack_params(*raw_params)

    # single-channel speech tensor, shape [1, num_samples] -> T = 8 frames
    num_samples = 8 * FRAME_LEN
    waveforms = jax.random.normal(k_wave, (1, num_samples), jnp.float32)

    # run the Pallas kernel once and block on its output
    xT, T, tile_t = frame_waveform(waveforms)
    path = run_acoustic_model(xT, packed[0], packed[1], tile_t)
    jax.block_until_ready(path)

    # full forward (kernel + host decode) — transcript computed but not printed,
    # matching the module's return-a-string semantics.
    # TODO(synk): string decoding has no Pallas equivalent; it stays on host.
    _transcript = speech_recognizer_forward(waveforms, packed)

    print("KERNEL_OK")
</pallas_src>

<mosaic_0001>
module attributes {stable_mosaic.version = 11 : i64} {
  func.func @_speech_kernel(%arg0: i32, %arg1: memref<32x128xbf16, #tpu.memory_space<vmem>>, %arg2: memref<64x32xbf16, #tpu.memory_space<vmem>>, %arg3: memref<32x2xf32, #tpu.memory_space<vmem>>, %arg4: memref<1x128xi32, #tpu.memory_space<vmem>>) attributes {dimension_semantics = [#tpu.dimension_semantics<parallel>], iteration_bounds = array<i64: 1>, scalar_prefetch = 0 : i64, scratch_operands = 0 : i64, tpu.core_type = #tpu.core_type<tc>, window_params = [{transform_indices = @transform_0, window_bounds = array<i64: 32, 128>}, {pipeline_mode = #tpu.pipeline_mode<synchronous>, transform_indices = @transform_1, window_bounds = array<i64: 64, 32>}, {pipeline_mode = #tpu.pipeline_mode<synchronous>, transform_indices = @transform_2, window_bounds = array<i64: 32, 2>}, {transform_indices = @transform_3, window_bounds = array<i64: 1, 128>}]} {
    %c0 = arith.constant 0 : index
    %c0_0 = arith.constant 0 : index
    %0 = vector.load %arg1[%c0, %c0_0] : memref<32x128xbf16, #tpu.memory_space<vmem>>, vector<32x128xbf16>
    %c0_1 = arith.constant 0 : index
    %c0_2 = arith.constant 0 : index
    %1 = vector.load %arg2[%c0_1, %c0_2] : memref<64x32xbf16, #tpu.memory_space<vmem>>, vector<32x32xbf16>
    %c32 = arith.constant 32 : index
    %c0_3 = arith.constant 0 : index
    %2 = vector.load %arg2[%c32, %c0_3] : memref<64x32xbf16, #tpu.memory_space<vmem>>, vector<32x32xbf16>
    %cst = arith.constant dense<0.000000e+00> : vector<32x128xf32>
    %3 = tpu.matmul %1, %0, %cst {dimension_numbers = #tpu.dot_dimension_numbers<[1], [0], [0], [1], [0, 0, 1, 1], [], []>} : vector<32x32xbf16>, vector<32x128xbf16>, vector<32x128xf32> -> vector<32x128xf32>
    %c0_4 = arith.constant 0 : index
    %c0_5 = arith.constant 0 : index
    %4 = vector.load %arg3[%c0_4, %c0_5] : memref<32x2xf32, #tpu.memory_space<vmem>>, vector<32x1xf32>
    %5 = vector.broadcast %4 : vector<32x1xf32> to vector<32x128xf32>
    %6 = arith.addf %3, %5 : vector<32x128xf32>
    %cst_6 = arith.constant 0.000000e+00 : f32
    %7 = vector.broadcast %cst_6 : f32 to vector<32x128xf32>
    %8 = arith.maximumf %6, %7 : vector<32x128xf32>
    %9 = arith.truncf %8 : vector<32x128xf32> to vector<32x128xbf16>
    %cst_7 = arith.constant dense<0.000000e+00> : vector<32x128xf32>
    %10 = tpu.matmul %2, %9, %cst_7 {dimension_numbers = #tpu.dot_dimension_numbers<[1], [0], [0], [1], [0, 0, 1, 1], [], []>} : vector<32x32xbf16>, vector<32x128xbf16>, vector<32x128xf32> -> vector<32x128xf32>
    %c0_8 = arith.constant 0 : index
    %c1 = arith.constant 1 : index
    %11 = vector.load %arg3[%c0_8, %c1] : memref<32x2xf32, #tpu.memory_space<vmem>>, vector<32x1xf32>
    %12 = vector.broadcast %11 : vector<32x1xf32> to vector<32x128xf32>
    %13 = arith.addf %10, %12 : vector<32x128xf32>
    %14 = tpu.iota {dimensions = array<i32: 0>} : vector<32x128xi32>
    %cst_9 = arith.constant dense<0xFF800000> : vector<128xf32>
    %15 = vector.multi_reduction <maximumf>, %13, %cst_9 [0] : vector<32x128xf32> to vector<128xf32>
    %16 = vector.shape_cast %15 : vector<128xf32> to vector<1x128xf32>
    %17 = vector.broadcast %16 : vector<1x128xf32> to vector<32x128xf32>
    %18 = arith.cmpf oeq, %13, %17 : vector<32x128xf32>
    %c32_i32 = arith.constant 32 : i32
    %19 = vector.broadcast %c32_i32 : i32 to vector<32x128xi32>
    %20 = arith.select %18, %14, %19 : vector<32x128xi1>, vector<32x128xi32>
    %cst_10 = arith.constant dense<2147483647> : vector<128xi32>
    %21 = vector.multi_reduction <minsi>, %20, %cst_10 [0] : vector<32x128xi32> to vector<128xi32>
    %22 = vector.shape_cast %21 : vector<128xi32> to vector<1x128xi32>
    %c31_i32 = arith.constant 31 : i32
    %23 = vector.broadcast %c31_i32 : i32 to vector<1x128xi32>
    %24 = arith.minsi %22, %23 : vector<1x128xi32>
    %c0_11 = arith.constant 0 : index
    %c0_12 = arith.constant 0 : index
    %25 = vector.load %arg4[%c0_11, %c0_12] : memref<1x128xi32, #tpu.memory_space<vmem>>, vector<1x128xi32>
    tpu.vector_store %arg4[%c0_11, %c0_12], %24 {strides = array<i32>} : memref<1x128xi32, #tpu.memory_space<vmem>>, vector<1x128xi32>,
    return
  }
  func.func @transform_0(%arg0: i32) -> (i32, i32) {
    %c0_i32 = arith.constant 0 : i32
    %c0_i32_0 = arith.constant 0 : i32
    return %c0_i32, %arg0 : i32, i32
  }
  func.func @transform_1(%arg0: i32) -> (i32, i32) {
    %c0_i32 = arith.constant 0 : i32
    %c0_i32_0 = arith.constant 0 : i32
    %c0_i32_1 = arith.constant 0 : i32
    return %c0_i32, %c0_i32_0 : i32, i32
  }
  func.func @transform_2(%arg0: i32) -> (i32, i32) {
    %c0_i32 = arith.constant 0 : i32
    %c0_i32_0 = arith.constant 0 : i32
    %c0_i32_1 = arith.constant 0 : i32
    return %c0_i32, %c0_i32_0 : i32, i32
  }
  func.func @transform_3(%arg0: i32) -> (i32, i32) {
    %c0_i32 = arith.constant 0 : i32
    %c0_i32_0 = arith.constant 0 : i32
    return %c0_i32, %arg0 : i32, i32
  }
}

</mosaic_0001>

<bundles_post_ra>
// kernel: tpu_custom_call.1
= control target key start
LH: loop header
LB: loop body
LE: loop exit
PB: predicated region body
PF: predicated region fallthrough
CT: control target
= control target key end

     0   :  { %vm74_vm0 = vcmask 261120   ;;  %v342_v3 = vmov 0   ;;  %s411_s0 = inlined_call_operand.vmem [shape: bf16[32,128], index: 0, kind: input, shape index: {}]   ;;  %s412_s1 = inlined_call_operand.vmem [shape: bf16[64,32], index: 1, kind: input, shape index: {}]   ;;  %s413_s2 = inlined_call_operand.vmem [shape: f32[32,2], index: 2, kind: input, shape index: {}]   ;;  %s414_s3 = inlined_call_operand.hbm [shape: s32[1,128], index: 3, kind: output, shape index: {}]  }
   0x1   :  { %v312_v0 = vld [vmem:[%s411_s0] sm:$0xff]   ;;  %v313_v1 = vld [vmem:[%s411_s0 + $0x8] sm:$0xff]   ;;  %308 = vset.pattern.permute.xlu0 %v342_v3  ;;  %309 = vset.pattern.permute.xlu1 %v342_v3  ;;  %v30_v6 = vld [vmem:[%s413_s2 + $0x10] sm:$0xff] }
   0x2   :  { %289 = vmatprep.subr.bf16.mxu0 %v312_v0  ;;  %v314_v2 = vld [vmem:[%s412_s1] sm:$0xff]   ;;  %v315_v4 = vld [vmem:[%s412_s1 + $0x8] sm:$0xff]   ;;  %44 = vperm.xlu1 %309, %v30_v6   ;;  %v31_v8 = vld [vmem:[%s413_s2 + $0x18] sm:$0xff] }
   0x3   :  { %290 = vmatpush3.bf16.msra.mxu0 %v312_v0  ;;  %293 = vmatprep.mubr.msk.bf16.mxu0 %vm74_vm0, %v314_v2  ;;  %v28_v5 = vld [vmem:[%s413_s2] sm:$0xff]  ;;  %v29_v7 = vld [vmem:[%s413_s2 + $0x8] sm:$0xff] }
   0x4   :  { %291 = vmatprep.subr.bf16.mxu0 %v313_v1  ;;  %34 = vperm.xlu0 %308, %v28_v5  }
   0x5   :  { %8 = vsyncpa [#allocation3], 0  ;;  %v316_v9 = vld [vmem:[%s412_s1 + $0x10] sm:$0xff]   ;;  %v343_v10 = vmov 1   ;;  %v317_v29 = vld [vmem:[%s412_s1 + $0x18] sm:$0xff]   ;;  %v217_v46 = vlaneseq  ;;  %s344_s1 = smov [#allocation2]  }
   0x6   :  { %49 = vperm.xlu1 %309, %v31_v8   ;;  %301 = vmatprep.mubr.msk.bf16.mxu1 %vm74_vm0, %v316_v9  ;;  %s263_s30 = sshll.u32 %s344_s1, 4  ;;  %s264_s30 = int_to_ptr.vmem [resolvable:$true] %s263_s30 }
   0x7   :  { %292 = vmatpush3.bf16.msra.mxu0 %v313_v1  ;;  %v218_v49 = vshrl.u32 %v217_v46, 7  ;;  %s318_s4 = scalar_lea.vmem %s264_s30, 16  ;;  %s322_s5 = scalar_lea.vmem %s264_s30, 32 }
   0x8   :  { %39 = vperm.xlu0 %308, %v29_v7   ;;  %p319_p0 = scmp.ne.s32.totalorder %s264_s30, %s318_s4  ;;  %p323_p1 = scmp.lt.s32.totalorder %s264_s30, %s264_s30 }
   0x9   :  { %v219_v52 = vadd.s32 8, %v218_v49  ;;  %v220_v53 = vadd.s32 16, %v218_v49  ;;  %v221_v54 = vadd.s32 24, %v218_v49  ;;  %p324_p2 = scmp.lt.s32.totalorder %s322_s5, %s318_s4 }
   0xa   :  { %294 = vmatmul.mubr.msk.bf16.vlgmr.msra.gmra.mrb[0].mxu0 %vm74_vm0, %v315_v4  ;;  %311 = vset.pattern.permute.xlu1 %v343_v10 }
   0xb   :  { %141 = vperm.xlu1 %311, %v29_v7   ;;  %p325_p3 = por %p324_p2, %p323_p1 }
   0xc   :  { %310 = vset.pattern.permute.xlu0 %v343_v10 }
   0xd   :  { %137 = vperm.xlu0 %310, %v28_v5   ;;  %p326_p4 = pnand %p325_p3, %p319_p0 }
   0xf   :  { %145 = vperm.xlu1 %311, %v30_v6  }
  0x11   :  { %149 = vperm.xlu0 %310, %v31_v8  }
  0x81   :  { %v45_v11 = vpop.permute.xlu1 %44 }
  0x83   :  { %v35_v12 = vpop.permute.xlu0 %34 }
  0x85   :  { %v50_v14 = vpop.permute.xlu1 %49 }
  0x87   :  { %v40_v19 = vpop.permute.xlu0 %39 }
  0x8a   :  { %v142_v30 = vpop.permute.xlu1 %141 }
  0x8c   :  { %v138_v31 = vpop.permute.xlu0 %137 }
  0x8e   :  { %v146_v32 = vpop.permute.xlu1 %145 }
  0x90   :  { %v150_v35 = vpop.permute.xlu0 %149 }
  0xdd   :  { %v295_v13 = vpop.f32.mrb[0].mxu0 }
  0xde   :  { %v124_v15 = vadd.f32 %v295_v13, %v45_v11  ;;  %v115_v16 = vpop.f32.mrb[1].mxu0 }
  0xdf   :  { %v116_v17 = vadd.f32 %v115_v16, %v35_v12  ;;  %v296_v18 = vpop.f32.mrb[2].mxu0 }
  0xe0   :  { %v127_v20 = vadd.f32 %v296_v18, %v50_v14  ;;  %v118_v21 = vpop.f32.mrb[3].mxu0  ;;  %v132_v23 = vmax.f32 %v124_v15, 0.0 }
  0xe1   :  { %v119_v22 = vadd.f32 %v118_v21, %v40_v19  ;;  %v130_v25 = vmax.f32 %v116_v17, 0.0 }
  0xe2   :  { %v133_v24 = vmax.f32 %v127_v20, 0.0 }
  0xe3   :  { %v131_v26 = vmax.f32 %v119_v22, 0.0 }
  0xe4   :  { %v135_v27 = vpack.c.bf16 %v133_v24, %v132_v23 }
  0xe5   :  { %v134_v28 = vpack.c.bf16 %v131_v26, %v130_v25 }
  0xe7   :  { %297 = vmatprep.subr.bf16.mxu1 %v134_v28 }
  0xe8   :  { %298 = vmatpush3.bf16.msra.mxu1 %v134_v28 }
  0xe9   :  { %299 = vmatprep.subr.bf16.mxu1 %v135_v27 }
  0xec   :  { %300 = vmatpush3.bf16.msra.mxu1 %v135_v27 }
  0xef   :  { %302 = vmatmul.mubr.msk.bf16.vlgmr.msra.gmra.mrb[0].mxu1 %vm74_vm0, %v317_v29 }
 0x1c2   :  { %v303_v33 = vpop.f32.mrb[0].mxu1 }
 0x1c3   :  { %v202_v34 = vpop.f32.mrb[1].mxu1  ;;  %v211_v37 = vadd.f32 %v303_v33, %v146_v32 }
 0x1c4   :  { %v304_v36 = vpop.f32.mrb[2].mxu1  ;;  %v203_v40 = vadd.f32 %v202_v34, %v138_v31 }
 0x1c5   :  { %v214_v38 = vadd.f32 %v304_v36, %v150_v35  ;;  %v205_v39 = vpop.f32.mrb[3].mxu1 }
 0x1c6   :  { %v206_v41 = vadd.f32 %v205_v39, %v142_v30 }
 0x1c7   :  { %v223_v42 = vmax.f32 %v211_v37, %v214_v38 }
 0x1c8   :  { %v222_v43 = vmax.f32 %v203_v40, %v206_v41 }
 0x1ca   :  { %v224_v44 = vmax.f32 %v222_v43, %v223_v42 }
 0x1cc   :  { %v225_v45 = vrot.slane %v224_v44, 4 }
 0x1ce   :  { %v226_v47 = vmax.f32 %v224_v44, %v225_v45 }
 0x1d0   :  { %v227_v48 = vrot.slane %v226_v47, 2 }
 0x1d2   :  { %v228_v50 = vmax.f32 %v226_v47, %v227_v48 }
 0x1d4   :  { %v229_v51 = vrot.slane %v228_v50, 1 }
 0x1d6   :  { %v230_v55 = vmax.f32 %v228_v50, %v229_v51 }
 0x1d8   :  { %vm231_vm1 = vcmp.eq.f32.partialorder %v203_v40, %v230_v55  ;;  %vm232_vm2 = vcmp.eq.f32.partialorder %v206_v41, %v230_v55  ;;  %vm233_vm3 = vcmp.eq.f32.partialorder %v211_v37, %v230_v55  ;;  %vm234_vm4 = vcmp.eq.f32.partialorder %v214_v38, %v230_v55 }
 0x1d9   :  { %v235_v56 = vsel %vm231_vm1, %v218_v49, 32  ;;  %v236_v57 = vsel %vm232_vm2, %v219_v52, 32  ;;  %v237_v58 = vsel %vm233_vm3, %v220_v53, 32  ;;  %v238_v59 = vsel %vm234_vm4, %v221_v54, 32 }
 0x1da   :  { %vm239_vm5 = vcmp.lt.s32.totalorder %v235_v56, %v236_v57  ;;  %vm241_vm6 = vcmp.lt.s32.totalorder %v237_v58, %v238_v59 }
 0x1db   :  { %v240_v60 = vsel %vm239_vm5, %v235_v56, %v236_v57  ;;  %v242_v61 = vsel %vm241_vm6, %v237_v58, %v238_v59 }
 0x1dc   :  { %vm243_vm7 = vcmp.lt.s32.totalorder %v240_v60, %v242_v61 }
 0x1dd   :  { %v244_v62 = vsel %vm243_vm7, %v240_v60, %v242_v61 }
 0x1de   :  { %v245_v63 = vrot.slane %v244_v62, 4 }
 0x1e0   :  { %vm246_vm8 = vcmp.lt.s32.totalorder %v244_v62, %v245_v63 }
 0x1e1   :  { %v247_v0 = vsel %vm246_vm8, %v244_v62, %v245_v63 }
 0x1e2   :  { %v248_v1 = vrot.slane %v247_v0, 2 }
 0x1e4   :  { %vm249_vm9 = vcmp.lt.s32.totalorder %v247_v0, %v248_v1 }
 0x1e5   :  { %v250_v2 = vsel %vm249_vm9, %v247_v0, %v248_v1 }
 0x1e6   :  { %v251_v3 = vrot.slane %v250_v2, 1 }
 0x1e8   :  { %vm252_vm10 = vcmp.lt.s32.totalorder %v250_v2, %v251_v3 }
 0x1e9   :  { %v253_v4 = vsel %vm252_vm10, %v250_v2, %v251_v3 }
 0x1ea   :  { %vm254_vm11 = vcmp.lt.s32.totalorder %v253_v4, 31 }
 0x1eb   :  { %v255_v5 = vsel %vm254_vm11, %v253_v4, 31 }
 0x1ec   :  { %256 = vst [vmem:[#allocation2] sm:$0x1] %v255_v5 }
 0x1ed   :  { %329 = shalt.err (!%p326_p4)
}
 0x1ee   :  { %s330_s8 = scalar_lea.hbm %s414_s3, 16 }
 0x1ef   :  { %p331_p5 = scmp.ne.s32.totalorder %s414_s3, %s330_s8  ;;  %p334_p6 = scmp.lt.u32.totalorder %s330_s8, %s414_s3 }
 0x1f1   :  { %p336_p7 = pnand %p334_p6, %p331_p5 }
 0x1f3   :  { %339 = shalt.err (!%p336_p7)
}
 0x1f4   :  { %266 = dma.vmem_to_hbm [thread:$0]  %s264_s30, 16, %s414_s3, [#allocation3]  }
 0x1f5   :  { %340 = dma.done.wait [#allocation3], 16  }
 0x1f6   :  { %341 = vsyncadd [#allocation3], 4294967280 }
 0x1f7   :  { %270 = vsyncpa [#allocation3], 1 }

</bundles_post_ra>
